<compile_context>
chip_gen: v7x
topology: tpu7x:2x2x1
jax: 0.10.0
libtpu: 0.0.40
codegen_flags: <defaults>
</compile_context>

<pallas_src>
import functools

import jax
import jax.numpy as jnp
from jax import lax
from jax.experimental import pallas as pl
from jax.experimental.pallas import tpu as pltpu

LANES = 128
# Combined HBM bytes (both inputs) moved per grid step.
TARGET_STEP_BYTES = 8 * 1024 * 1024
# Input double-buffers need 2 x TARGET_STEP_BYTES = 16 MiB; raise the scoped
# VMEM limit so this compiles on v5e (16 MiB default) and still leaves plenty
# of headroom on v7x (64 MiB physical, 32 MiB default scope).
VMEM_LIMIT_BYTES = 32 * 1024 * 1024
# Dtypes kept native (anything else is upcast to f32 in the wrapper).
_NATIVE_DTYPES = (jnp.float32, jnp.bfloat16)


def _pinball_kernel(yp_ref, yt_ref, part_ref, acc_ref, *,
                    alpha, block_rows, valid_rows, blocks_per_core, need_mask):
    """Accumulate lane-parallel pinball-loss partial sums.

    Grid is (core_splits, steps_per_core): the first axis is "parallel"
    (megacore sharding on v7x), the second is the serial reduction over row
    blocks.  Each core slice owns one (1, 1, LANES) partial-sum output block;
    the tiny final cross-lane reduction is done by the wrapper in plain JAX.
    """
    step = pl.program_id(1)

    @pl.when(step == 0)
    def _():
        acc_ref[...] = jnp.zeros_like(acc_ref)

    errors = yt_ref[...].astype(jnp.float32) - yp_ref[...].astype(jnp.float32)
    # max(a*e, (a-1)*e) == e * (a if e >= 0 else a - 1): one select + one mul
    # on the VPU instead of two muls + a max.
    loss = errors * jnp.where(errors >= 0.0, alpha, alpha - 1.0)

    if need_mask:
        # Only the (at most one) ragged block and the (at most one) padded
        # grid step ever need masking; every other step takes the unmasked
        # fast path so the VPU stays off the critical path at v7x bandwidth.
        logical_blk = pl.program_id(0) * blocks_per_core + step
        remaining = valid_rows - logical_blk * block_rows  # scalar rows left

        @pl.when(remaining >= block_rows)
        def _():
            acc_ref[...] += jnp.sum(loss, axis=0, keepdims=True)

        @pl.when(remaining < block_rows)
        def _():
            # Plain iota vs a scalar bound (no per-lane index add needed).
            row_ids = lax.broadcasted_iota(jnp.int32, loss.shape, 0)
            masked = jnp.where(row_ids < remaining, loss, 0.0)
            acc_ref[...] += jnp.sum(masked, axis=0, keepdims=True)
    else:
        acc_ref[...] += jnp.sum(loss, axis=0, keepdims=True)

    @pl.when(step == pl.num_programs(1) - 1)
    def _():
        part_ref[...] = acc_ref[...].reshape(part_ref.shape)


def _pinball_sum_jnp(yp, yt, alpha):
    """Plain-JAX pinball-loss SUM (used for the <128-element lane tail)."""
    e = yt.astype(jnp.float32) - yp.astype(jnp.float32)
    return jnp.sum(e * jnp.where(e >= 0.0, alpha, alpha - 1.0))


def pinball_loss(y_pred, y_true, alpha=0.9, *, _max_block_rows=None):
    """Pinball (quantile) loss, mean-reduced over all elements.

    `_max_block_rows` is a private test knob (must be a multiple of 8) that
    caps the row-block size so the multi-block / masked / core-split code
    paths can be exercised on small inputs.
    """
    assert 0.0 < alpha < 1.0, "Alpha must be in (0, 1)."
    assert y_pred.shape == y_true.shape
    alpha = float(alpha)

    n_elems = int(y_pred.size)

    # Keep f32 / bf16 inputs in their native dtype (bf16 halves HBM traffic,
    # the binding resource); anything else is upcast to f32.  Mixed bf16/f32
    # pairs are passed through as-is and upcast inside the kernel, avoiding a
    # wrapper-side astype copy.
    def as_native(x):
        if any(x.dtype == d for d in _NATIVE_DTYPES):
            return x
        return x.astype(jnp.float32)

    yp = as_native(jnp.ravel(y_pred))   # ravel of a contiguous array is free
    yt = as_native(jnp.ravel(y_true))

    rem = n_elems % LANES
    main = n_elems - rem

    if main == 0:
        # Fewer than 128 elements: a kernel launch is not worth it.
        return _pinball_sum_jnp(yp, yt, alpha) / n_elems

    tail_sum = None
    if rem:
        # No jnp.pad of the full arrays: the <128-element lane remainder is
        # summed with plain JAX and folded into the kernel's partial sum.
        tail_sum = _pinball_sum_jnp(yp[main:], yt[main:], alpha)
        # TODO(synk): XLA may still materialize this prefix slice as a copy;
        # a fully zero-copy ragged path would need a 1D-blocked kernel.
        yp = yp[:main]
        yt = yt[:main]

    rows = main // LANES
    yp2 = yp.reshape(rows, LANES)
    yt2 = yt.reshape(rows, LANES)

    # Block sizing: keep combined bytes/step roughly constant across dtypes
    # (f32/f32 -> 8192 rows, bf16/bf16 -> 16384, mixed -> 10752).
    bytes_per_row = LANES * (yp2.dtype.itemsize + yt2.dtype.itemsize)
    max_rows = max(512, (TARGET_STEP_BYTES // bytes_per_row) // 512 * 512)
    if _max_block_rows is not None:
        max_rows = min(max_rows, int(_max_block_rows))
    block_rows = min(max_rows, rows)   # block == full dim is always legal

    total_blocks = -(-rows // block_rows)
    # Leading "parallel" axis: on v7x (2 TCs/chip) each core streams half the
    # row blocks into its own partial; on v5e/v6e (1 TC) it runs serially at
    # negligible extra cost.
    core_splits = 2 if total_blocks >= 2 else 1
    blocks_per_core = -(-total_blocks // core_splits)
    grid = (core_splits, blocks_per_core)
    grid_padded = core_splits * blocks_per_core != total_blocks
    need_mask = grid_padded or (rows % block_rows != 0)

    if grid_padded:
        # Clamp the (fully masked) padded step so its DMA stays in bounds.
        def in_index_map(c, s):
            return (jnp.minimum(c * blocks_per_core + s, total_blocks - 1), 0)
    else:
        def in_index_map(c, s):
            return (c * blocks_per_core + s, 0)

    kernel = functools.partial(
        _pinball_kernel,
        alpha=alpha,
        block_rows=block_rows,
        valid_rows=rows,
        blocks_per_core=blocks_per_core,
        need_mask=need_mask,
    )

    cost = pl.CostEstimate(
        flops=3 * main,
        transcendentals=0,
        bytes_accessed=rows * bytes_per_row + core_splits * LANES * 4,
    )

    partials = pl.pallas_call(
        kernel,
        out_shape=jax.ShapeDtypeStruct((core_splits, 1, LANES), jnp.float32),
        grid_spec=pltpu.PrefetchScalarGridSpec(
            num_scalar_prefetch=0,
            grid=grid,
            in_specs=[
                pl.BlockSpec((block_rows, LANES), in_index_map),
                pl.BlockSpec((block_rows, LANES), in_index_map),
            ],
            out_specs=pl.BlockSpec((1, 1, LANES), lambda c, s: (c, 0, 0)),
            scratch_shapes=[pltpu.VMEM((1, LANES), jnp.float32)],
        ),
        compiler_params=pltpu.CompilerParams(
            dimension_semantics=("parallel", "arbitrary"),
            vmem_limit_bytes=VMEM_LIMIT_BYTES,
        ),
        cost_estimate=cost,
    )(yp2, yt2)

    total = jnp.sum(partials)
    if tail_sum is not None:
        total = total + tail_sum
    return total * (1.0 / n_elems)


def _reference(y_pred, y_true, alpha):
    e = y_true.astype(jnp.float32) - y_pred.astype(jnp.float32)
    return jnp.mean(jnp.maximum(alpha * e, (alpha - 1.0) * e))


if __name__ == "__main__":
    key = jax.random.PRNGKey(0)

    def check(shape, dtype, alpha, **kw):
        k1, k2 = jax.random.split(jax.random.fold_in(key, hash(shape) & 0xFFFF))
        yp = jax.random.normal(k1, shape, dtype=jnp.float32).astype(dtype)
        yt = jax.random.normal(k2, shape, dtype=jnp.float32).astype(dtype)
        got = jax.block_until_ready(pinball_loss(yp, yt, alpha=alpha, **kw))
        ref = _reference(yp, yt, alpha)
        assert jnp.allclose(got, ref, rtol=1e-5, atol=1e-6), (shape, dtype, got, ref)

    # Main case: NCHW-like prediction tensor, 128-aligned size (fast path).
    check((2, 4, 16, 16), jnp.float32, 0.9)
    # Lane-unaligned size: exercises the wrapper-side tail path (no pad).
    check((5, 13, 17), jnp.float32, 0.9)
    # Multi-block + ragged rows + padded grid + 2-way core split (small via
    # the private block-size knob).
    check((4, 5, 128), jnp.float32, 0.3, _max_block_rows=8)
    # bf16 inputs stay bf16 on the HBM side.
    check((2, 4, 16, 16), jnp.bfloat16, 0.75)

    print("KERNEL_OK")
</pallas_src>

<mosaic_0001>
module attributes {stable_mosaic.version = 11 : i64} {
  func.func @_pinball_kernel(%arg0: i32, %arg1: i32, %arg2: memref<16x128xf32, #tpu.memory_space<vmem>>, %arg3: memref<16x128xf32, #tpu.memory_space<vmem>>, %arg4: memref<1x1x128xf32, #tpu.memory_space<vmem>>, %arg5: memref<1x128xf32, #tpu.memory_space<vmem>>) attributes {dimension_semantics = [#tpu.dimension_semantics<parallel>, #tpu.dimension_semantics<arbitrary>], iteration_bounds = array<i64: 1, 1>, scalar_prefetch = 0 : i64, scratch_operands = 1 : i64, tpu.core_type = #tpu.core_type<tc>, window_params = [{transform_indices = @transform_0, window_bounds = array<i64: 16, 128>}, {transform_indices = @transform_1, window_bounds = array<i64: 16, 128>}, {transform_indices = @transform_2, window_bounds = array<i64: 1, 1, 128>}]} {
    %c0_i32 = arith.constant 0 : i32
    %0 = arith.cmpi eq, %arg1, %c0_i32 : i32
    %1 = arith.extui %0 : i1 to i32
    %c0_i32_0 = arith.constant 0 : i32
    %2 = arith.cmpi ne, %1, %c0_i32_0 : i32
    scf.if %2 {
      %cst_13 = arith.constant 0.000000e+00 : f32
      %20 = vector.broadcast %cst_13 : f32 to vector<1x128xf32>
      %c0_14 = arith.constant 0 : index
      %c0_15 = arith.constant 0 : index
      %21 = vector.load %arg5[%c0_14, %c0_15] : memref<1x128xf32, #tpu.memory_space<vmem>>, vector<1x128xf32>
      tpu.vector_store %arg5[%c0_14, %c0_15], %20 {strides = array<i32>} : memref<1x128xf32, #tpu.memory_space<vmem>>, vector<1x128xf32>,
    } else {
    }
    %c0 = arith.constant 0 : index
    %c0_1 = arith.constant 0 : index
    %3 = vector.load %arg3[%c0, %c0_1] : memref<16x128xf32, #tpu.memory_space<vmem>>, vector<16x128xf32>
    %c0_2 = arith.constant 0 : index
    %c0_3 = arith.constant 0 : index
    %4 = vector.load %arg2[%c0_2, %c0_3] : memref<16x128xf32, #tpu.memory_space<vmem>>, vector<16x128xf32>
    %5 = arith.subf %3, %4 : vector<16x128xf32>
    %cst = arith.constant 0.000000e+00 : f32
    %6 = vector.broadcast %cst : f32 to vector<16x128xf32>
    %7 = arith.cmpf oge, %5, %6 : vector<16x128xf32>
    %cst_4 = arith.constant 0.899999976 : f32
    %cst_5 = arith.constant -1.000000e-01 : f32
    %8 = vector.broadcast %cst_4 : f32 to vector<16x128xf32>
    %9 = vector.broadcast %cst_5 : f32 to vector<16x128xf32>
    %10 = arith.select %7, %8, %9 : vector<16x128xi1>, vector<16x128xf32>
    %11 = arith.mulf %5, %10 : vector<16x128xf32>
    %c0_6 = arith.constant 0 : index
    %c0_7 = arith.constant 0 : index
    %12 = vector.load %arg5[%c0_6, %c0_7] : memref<1x128xf32, #tpu.memory_space<vmem>>, vector<1x128xf32>
    %cst_8 = arith.constant dense<0.000000e+00> : vector<128xf32>
    %13 = vector.multi_reduction <add>, %11, %cst_8 [0] : vector<16x128xf32> to vector<128xf32>
    %14 = vector.shape_cast %13 : vector<128xf32> to vector<1x128xf32>
    %15 = arith.addf %12, %14 : vector<1x128xf32>
    %c0_9 = arith.constant 0 : index
    %c0_10 = arith.constant 0 : index
    %16 = vector.load %arg5[%c0_9, %c0_10] : memref<1x128xf32, #tpu.memory_space<vmem>>, vector<1x128xf32>
    tpu.vector_store %arg5[%c0_9, %c0_10], %15 {strides = array<i32>} : memref<1x128xf32, #tpu.memory_space<vmem>>, vector<1x128xf32>,
    %c0_i32_11 = arith.constant 0 : i32
    %17 = arith.cmpi eq, %arg1, %c0_i32_11 : i32
    %18 = arith.extui %17 : i1 to i32
    %c0_i32_12 = arith.constant 0 : i32
    %19 = arith.cmpi ne, %18, %c0_i32_12 : i32
    scf.if %19 {
      %c0_13 = arith.constant 0 : index
      %c0_14 = arith.constant 0 : index
      %20 = vector.load %arg5[%c0_13, %c0_14] : memref<1x128xf32, #tpu.memory_space<vmem>>, vector<1x128xf32>
      %21 = vector.shape_cast %20 : vector<1x128xf32> to vector<1x1x128xf32>
      %c0_15 = arith.constant 0 : index
      %c0_16 = arith.constant 0 : index
      %c0_17 = arith.constant 0 : index
      %22 = vector.load %arg4[%c0_15, %c0_16, %c0_17] : memref<1x1x128xf32, #tpu.memory_space<vmem>>, vector<1x1x128xf32>
      tpu.vector_store %arg4[%c0_15, %c0_16, %c0_17], %21 {strides = array<i32>} : memref<1x1x128xf32, #tpu.memory_space<vmem>>, vector<1x1x128xf32>,
    } else {
    }
    return
  }
  func.func @transform_0(%arg0: i32, %arg1: i32) -> (i32, i32) {
    %c1_i32 = arith.constant 1 : i32
    %0 = arith.muli %arg0, %c1_i32 : i32
    %1 = arith.addi %0, %arg1 : i32
    %c0_i32 = arith.constant 0 : i32
    %c0_i32_0 = arith.constant 0 : i32
    return %1, %c0_i32 : i32, i32
  }
  func.func @transform_1(%arg0: i32, %arg1: i32) -> (i32, i32) {
    %c1_i32 = arith.constant 1 : i32
    %0 = arith.muli %arg0, %c1_i32 : i32
    %1 = arith.addi %0, %arg1 : i32
    %c0_i32 = arith.constant 0 : i32
    %c0_i32_0 = arith.constant 0 : i32
    return %1, %c0_i32 : i32, i32
  }
  func.func @transform_2(%arg0: i32, %arg1: i32) -> (i32, i32, i32) {
    %c0_i32 = arith.constant 0 : i32
    %c0_i32_0 = arith.constant 0 : i32
    %c0_i32_1 = arith.constant 0 : i32
    return %arg0, %c0_i32, %c0_i32_0 : i32, i32, i32
  }
}

</mosaic_0001>

<bundles_post_ra>
// kernel: tpu_custom_call.1
= control target key start
LH: loop header
LB: loop body
LE: loop exit
PB: predicated region body
PF: predicated region fallthrough
CT: control target
= control target key end

     0   :  { %7 = vsyncpa [#allocation4], 0  ;;  %s237_s0 = inlined_call_operand.hbm [shape: f32[16,128], index: 0, kind: input, shape index: {}]   ;;  %s238_s1 = inlined_call_operand.hbm [shape: f32[16,128], index: 1, kind: input, shape index: {}]   ;;  %s239_s2 = inlined_call_operand.hbm [shape: f32[1,1,128], index: 2, kind: output, shape index: {}]  }
   0x1   :  { %8 = vsyncpa [#allocation7], 0 }
   0x2   :  { %9 = vsyncpa [#allocation5], 0  ;;  %s179_s9 = smov [#allocation3]   ;;  %s107_s13 = scalar_lea.hbm %s237_s0, 256 }
   0x3   :  { %s19_s10 = sshll.u32 %s179_s9, 4  ;;  %p108_p0 = scmp.ne.s32.totalorder %s237_s0, %s107_s13  ;;  %s20_s10 = int_to_ptr.vmem [resolvable:$true] %s19_s10 }
   0x4   :  { %p111_p1 = scmp.lt.u32.totalorder %s107_s13, %s237_s0 }
   0x6   :  { %p113_p2 = pnand %p111_p1, %p108_p0 }
   0x8   :  { %116 = shalt.err (!%p113_p2)
}
   0x9   :  { %s117_s18 = scalar_lea.vmem %s20_s10, 256  ;;  %p122_p4 = scmp.lt.s32.totalorder %s20_s10, %s20_s10 }
   0xa   :  { %p118_p3 = scmp.ne.s32.totalorder %s20_s10, %s117_s18  ;;  %p123_p5 = scmp.lt.s32.totalorder %s117_s18, %s117_s18 }
   0xc   :  { %p124_p6 = por %p123_p5, %p122_p4 }
   0xe   :  { %p125_p7 = pnand %p124_p6, %p118_p3 }
  0x10   :  { %128 = shalt.err (!%p125_p7)
}
  0x11   :  { %s180_s19 = smov 128   ;;  %s181_s20 = smov 8  }
  0x12   :  { %25 = dma.hbm_to_vmem [thread:$0]  %s237_s0, 256, %s20_s10, [#allocation4], %s180_s19, %s180_s19, %s181_s20  }
  0x13   :  { %s182_s23 = smov [#allocation6]   ;;  %s129_s27 = scalar_lea.hbm %s238_s1, 256 }
  0x14   :  { %s35_s24 = sshll.u32 %s182_s23, 4  ;;  %p130_p8 = scmp.ne.s32.totalorder %s238_s1, %s129_s27  ;;  %s36_s24 = int_to_ptr.vmem [resolvable:$true] %s35_s24 }
  0x15   :  { %p133_p9 = scmp.lt.u32.totalorder %s129_s27, %s238_s1 }
  0x17   :  { %p135_p10 = pnand %p133_p9, %p130_p8 }
  0x19   :  { %138 = shalt.err (!%p135_p10)
}
  0x1a   :  { %s139_s4 = scalar_lea.vmem %s36_s24, 256  ;;  %p144_p12 = scmp.lt.s32.totalorder %s36_s24, %s36_s24 }
  0x1b   :  { %p140_p11 = scmp.ne.s32.totalorder %s36_s24, %s139_s4  ;;  %p145_p13 = scmp.lt.s32.totalorder %s139_s4, %s139_s4 }
  0x1d   :  { %p146_p0 = por %p145_p13, %p144_p12 }
  0x1f   :  { %p147_p1 = pnand %p146_p0, %p140_p11 }
  0x21   :  { %150 = shalt.err (!%p147_p1)
}
  0x22   :  { %41 = dma.hbm_to_vmem [thread:$0]  %s238_s1, 256, %s36_s24, [#allocation7], %s180_s19, %s180_s19, %s181_s20  }
  0x23   :  { %173 = dma.done.wait [#allocation4], 256  }
  0x24   :  { %174 = vsyncadd [#allocation4], 4294967040 }
  0x25   :  { %175 = dma.done.wait [#allocation7], 256  }
  0x26   :  { %176 = vsyncadd [#allocation7], 4294967040  ;;  %v183_v0 = vmov 0.0   ;;  %v57_v1 = vld [vmem:[#allocation6] sm:$0xff]  ;;  %v58_v2 = vld [vmem:[#allocation6 + $0x8] sm:$0xff]  ;;  %s185_s1 = smov [#allocation8]  }
  0x27   :  { %56 = vst [vmem:[#allocation2] sm:$0x1] %v183_v0  ;;  %v59_v3 = vld [vmem:[#allocation3] sm:$0xff]  ;;  %v60_v4 = vld [vmem:[#allocation3 + $0x8] sm:$0xff]  ;;  %v184_v7 = vmov -0.1  }
  0x28   :  { %v61_v5 = vsub.f32 %v57_v1, %v59_v3  ;;  %v62_v6 = vsub.f32 %v58_v2, %v60_v4  ;;  %s90_s6 = sshll.u32 %s185_s1, 4  ;;  %s91_s6 = int_to_ptr.vmem [resolvable:$true] %s90_s6 }
  0x29   :  { %s151_s7 = scalar_lea.vmem %s91_s6, 16  ;;  %s155_s8 = scalar_lea.vmem %s91_s6, 32 }
  0x2a   :  { %vm63_vm0 = vcmp.ge.f32.partialorder %v61_v5, 0.0  ;;  %vm64_vm1 = vcmp.ge.f32.partialorder %v62_v6, 0.0  ;;  %p152_p2 = scmp.ne.s32.totalorder %s91_s6, %s151_s7  ;;  %p156_p3 = scmp.lt.s32.totalorder %s91_s6, %s91_s6 }
  0x2b   :  { %v65_v8 = vsel %vm63_vm0, 0.9, %v184_v7  ;;  %v66_v9 = vsel %vm64_vm1, 0.9, %v184_v7  ;;  %p157_p4 = scmp.lt.s32.totalorder %s155_s8, %s151_s7 }
  0x2c   :  { %v67_v10 = vmul.f32 %v65_v8, %v61_v5  ;;  %v68_v11 = vmul.f32 %v66_v9, %v62_v6 }
  0x2d   :  { %p158_p5 = por %p157_p4, %p156_p3 }
  0x2e   :  { %v70_v12 = vadd.f32 %v68_v11, %v67_v10  ;;  %v69_v18 = vld [vmem:[#allocation2] sm:$0x1] }
  0x2f   :  { %p159_p6 = pnand %p158_p5, %p152_p2 }
  0x30   :  { %v71_v13 = vrot.slane %v70_v12, 4 }
  0x32   :  { %v72_v14 = vadd.f32 %v71_v13, %v70_v12 }
  0x34   :  { %v73_v15 = vrot.slane %v72_v14, 2 }
  0x36   :  { %v74_v16 = vadd.f32 %v73_v15, %v72_v14 }
  0x38   :  { %v75_v17 = vrot.slane %v74_v16, 1 }
  0x3a   :  { %v76_v19 = vadd.f32 %v75_v17, %v74_v16 }
  0x3c   :  { %v77_v20 = vadd.f32 %v76_v19, %v69_v18 }
  0x3e   :  { %78 = vst [vmem:[#allocation2] sm:$0x1] %v77_v20 }
  0x45   :  { %v82_v21 = vld [vmem:[#allocation2] sm:$0x1] }
  0x46   :  { %83 = vst [vmem:[#allocation8] sm:$0x1] %v82_v21 }
  0x47   :  { %162 = shalt.err (!%p159_p6)
}
  0x48   :  { %s163_s11 = scalar_lea.hbm %s239_s2, 16 }
  0x49   :  { %p164_p7 = scmp.ne.s32.totalorder %s239_s2, %s163_s11  ;;  %p167_p8 = scmp.lt.u32.totalorder %s163_s11, %s239_s2 }
  0x4b   :  { %p169_p9 = pnand %p167_p8, %p164_p7 }
  0x4d   :  { %172 = shalt.err (!%p169_p9)
}
  0x4e   :  { %93 = dma.vmem_to_hbm [thread:$0]  %s91_s6, 16, %s239_s2, [#allocation5]  }
  0x4f   :  { %177 = dma.done.wait [#allocation5], 16  }
  0x50   :  { %178 = vsyncadd [#allocation5], 4294967280 }
  0x51   :  { %97 = vsyncpa [#allocation4], 1 }
  0x52   :  { %98 = vsyncpa [#allocation7], 1 }
  0x53   :  { %99 = vsyncpa [#allocation5], 1 }

</bundles_post_ra>
